<compile_context>
chip_gen: v7x
topology: tpu7x:2x2x1
jax: 0.10.0
libtpu: 0.0.40
codegen_flags: <defaults>
</compile_context>

<pallas_src>
import jax
import jax.numpy as jnp
from jax.experimental import pallas as pl
from jax.experimental.pallas import tpu as pltpu


def gin_fused_kernel(eps_ref, x_ref, adj_ref, w1t_ref, w2t_ref, gamma_ref, beta_ref,
                     out_ref, y_buf, sum_acc, sq_acc):
    # Grid: (phase, batch).  phase 0 = aggregate + MLP + BN partial stats,
    #                        phase 1 = BatchNorm normalize + affine.
    p = pl.program_id(0)
    b = pl.program_id(1)

    @pl.when((p == 0) & (b == 0))
    def _init():
        sum_acc[...] = jnp.zeros_like(sum_acc)
        sq_acc[...] = jnp.zeros_like(sq_acc)

    @pl.when(p == 0)
    def _compute():
        # Per-batch blocks, (feature, node) orientation:
        #   x_ref: (F_in, N)   adj_ref: (N, N)
        #   w1t_ref: (MID, F_in)   w2t_ref: (F_out, MID)   (possibly bf16 MXU operands)
        eps = eps_ref[0]
        x = x_ref[...]
        adj = adj_ref[...]
        mm_dtype = w1t_ref.dtype

        # agg[f, i] = sum_j x[f, j] * adj[i, j]  ==  (adj @ x^T)^T, no transpose materialized.
        agg = jax.lax.dot_general(
            x, adj, dimension_numbers=(((1,), (1,)), ((), ())),
            preferred_element_type=jnp.float32)                    # (F_in, N) f32

        h = (1.0 + eps) * x.astype(jnp.float32) + agg              # elementwise in f32

        t = jnp.dot(w1t_ref[...], h.astype(mm_dtype),
                    preferred_element_type=jnp.float32)            # (MID, N) f32
        y = jnp.dot(w2t_ref[...], t.astype(mm_dtype),
                    preferred_element_type=jnp.float32)            # (F_out, N) f32

        # Keep y resident in VMEM for phase 1; accumulate BN partial stats from vregs.
        y_buf[b] = y
        sum_acc[...] += jnp.sum(y, axis=1, keepdims=True)
        sq_acc[...] += jnp.sum(y * y, axis=1, keepdims=True)

    @pl.when(p == 1)
    def _normalize():
        n_total = y_buf.shape[0] * y_buf.shape[2]                  # B * N, static
        inv_count = 1.0 / float(n_total)
        mean = sum_acc[...] * inv_count                            # (F_out, 1)
        var = sq_acc[...] * inv_count - mean * mean                # biased variance (train mode)
        inv = jax.lax.rsqrt(var + 1e-5)
        scale = gamma_ref[...] * inv
        shift = beta_ref[...] - mean * scale
        out_ref[...] = (y_buf[b] * scale + shift).astype(out_ref.dtype)


def gin_layer_forward(x, adj, eps, w1, w2, gamma, beta, *, matmul_dtype=jnp.float32):
    """x: (B, F_in, N), adj: (B, N, N) -> (B, F_out, N).

    matmul_dtype: dtype of the MXU operands (jnp.bfloat16 recommended on v5e/v6e/v7x);
    accumulation, elementwise math and BatchNorm are always f32."""
    B, F_in, N = x.shape
    MID = w1.shape[1]
    F_out = w2.shape[1]

    # Tiny parameter-side prep only (no activation-tensor transposes).
    x_in = x.astype(matmul_dtype)
    adj_in = adj.astype(matmul_dtype)
    w1t = w1.T.astype(matmul_dtype)                   # (MID, F_in)
    w2t = w2.T.astype(matmul_dtype)                   # (F_out, MID)
    gamma2 = gamma.reshape(F_out, 1).astype(jnp.float32)
    beta2 = beta.reshape(F_out, 1).astype(jnp.float32)
    eps_in = eps.astype(jnp.float32)

    def act_index(p, b):
        # Phase 0 sweeps batch blocks; phase 1 stays pinned on the block that was fetched
        # last, so no new input DMA is issued during the normalize phase.
        return ((1 - p) * b + p * (B - 1), 0, 0)

    def const2(p, b):
        return (0, 0)

    out = pl.pallas_call(
        gin_fused_kernel,
        out_shape=jax.ShapeDtypeStruct((B, F_out, N), jnp.float32),
        grid=(2, B),
        in_specs=[
            pl.BlockSpec(memory_space=pltpu.MemorySpace.SMEM),       # eps scalar (1,)
            pl.BlockSpec((None, F_in, N), act_index),                # x, per-batch block
            pl.BlockSpec((None, N, N), act_index),                   # adj, per-batch block
            pl.BlockSpec((MID, F_in), const2),                       # W1^T (resident)
            pl.BlockSpec((F_out, MID), const2),                      # W2^T (resident)
            pl.BlockSpec((F_out, 1), const2),                        # gamma (resident)
            pl.BlockSpec((F_out, 1), const2),                        # beta  (resident)
        ],
        # Phase 0 never writes the output; phase 1 writes batch block b (lane-dense on N).
        out_specs=pl.BlockSpec((None, F_out, N), lambda p, b: (p * b, 0, 0)),
        scratch_shapes=[
            pltpu.VMEM((B, F_out, N), jnp.float32),                  # y resident across phases
            pltpu.VMEM((F_out, 1), jnp.float32),                     # BN sum accumulator
            pltpu.VMEM((F_out, 1), jnp.float32),                     # BN sum-of-squares acc
        ],
        compiler_params=pltpu.CompilerParams(
            # Phase 1 depends on all of phase 0 and the stats accumulator is resident,
            # so both axes are sequential ("arbitrary").
            dimension_semantics=("arbitrary", "arbitrary"),
            vmem_limit_bytes=32 * 1024 * 1024,
        ),
    )(eps_in, x_in, adj_in, w1t, w2t, gamma2, beta2)

    # Output is already (B, F_out, N) -- no final transpose needed.
    return out


def reference_forward(x, adj, eps, w1, w2, gamma, beta):
    """Pure-JAX reference mirroring the PyTorch module (training-mode BN), f32 precision."""
    hp = jax.lax.Precision.HIGHEST
    xt = jnp.swapaxes(x, 1, 2)                                       # (B, N, F_in)
    h = (1.0 + eps[0]) * xt + jnp.einsum("bij,bjf->bif", adj, xt, precision=hp)
    y = jnp.einsum("bnm,mo->bno",
                   jnp.einsum("bnf,fm->bnm", h, w1, precision=hp),
                   w2, precision=hp)                                 # (B, N, F_out)
    B, N, F_out = y.shape
    yf = y.reshape(-1, F_out)
    mean = jnp.mean(yf, axis=0, keepdims=True)
    var = jnp.mean((yf - mean) ** 2, axis=0, keepdims=True)
    yf = (yf - mean) / jnp.sqrt(var + 1e-5) * gamma + beta
    return jnp.swapaxes(yf.reshape(B, N, F_out), 1, 2)


if __name__ == "__main__":
    # Small shapes consistent with the module: B=2 graphs, N=128 nodes (lane-dense),
    # in_features=32, out_features=16 (mid=32).
    B, N = 2, 128
    IN_FEATURES, OUT_FEATURES = 32, 16
    MID_FEATURES = OUT_FEATURES * 2

    key = jax.random.PRNGKey(0)
    kx, ka, kw1, kw2 = jax.random.split(key, 4)

    x = jax.random.normal(kx, (B, IN_FEATURES, N), dtype=jnp.float32)
    adj = jax.random.uniform(ka, (B, N, N), dtype=jnp.float32)

    # Deterministic parameters (math-layout weights: Linear(x) == x @ W, no bias).
    w1 = jax.random.normal(kw1, (IN_FEATURES, MID_FEATURES), dtype=jnp.float32) * 0.1
    w2 = jax.random.normal(kw2, (MID_FEATURES, OUT_FEATURES), dtype=jnp.float32) * 0.1
    eps = jnp.zeros((1,), dtype=jnp.float32)                  # self.epsilon = zeros(1)
    gamma = jnp.ones((OUT_FEATURES,), dtype=jnp.float32)      # BN weight init
    beta = jnp.zeros((OUT_FEATURES,), dtype=jnp.float32)      # BN bias init

    ref = reference_forward(x, adj, eps, w1, w2, gamma, beta)

    # f32 MXU path (exact module semantics).
    out = gin_layer_forward(x, adj, eps, w1, w2, gamma, beta, matmul_dtype=jnp.float32)
    out = jax.block_until_ready(out)
    assert out.shape == (B, OUT_FEATURES, N), out.shape
    assert jnp.allclose(out, ref, atol=2e-3, rtol=2e-3), "f32 path mismatch vs reference"

    # bf16 MXU path (perf mode: bf16 operands, f32 accumulation & BN).
    out_bf16 = gin_layer_forward(x, adj, eps, w1, w2, gamma, beta, matmul_dtype=jnp.bfloat16)
    out_bf16 = jax.block_until_ready(out_bf16)
    assert out_bf16.shape == (B, OUT_FEATURES, N), out_bf16.shape
    assert jnp.allclose(out_bf16, ref, atol=2e-1, rtol=2e-1), "bf16 path mismatch vs reference"

    print("KERNEL_OK")
</pallas_src>

<mosaic_0001>
module attributes {stable_mosaic.version = 11 : i64} {
  func.func @gin_fused_kernel(%arg0: i32, %arg1: i32, %arg2: memref<1xf32, #tpu.memory_space<smem>>, %arg3: memref<1x32x128xf32, #tpu.memory_space<vmem>>, %arg4: memref<1x128x128xf32, #tpu.memory_space<vmem>>, %arg5: memref<32x32xf32, #tpu.memory_space<vmem>>, %arg6: memref<16x32xf32, #tpu.memory_space<vmem>>, %arg7: memref<16x1xf32, #tpu.memory_space<vmem>>, %arg8: memref<16x1xf32, #tpu.memory_space<vmem>>, %arg9: memref<1x16x128xf32, #tpu.memory_space<vmem>>, %arg10: memref<2x16x128xf32, #tpu.memory_space<vmem>>, %arg11: memref<16x1xf32, #tpu.memory_space<vmem>>, %arg12: memref<16x1xf32, #tpu.memory_space<vmem>>) attributes {dimension_semantics = [#tpu.dimension_semantics<arbitrary>, #tpu.dimension_semantics<arbitrary>], iteration_bounds = array<i64: 2, 2>, scalar_prefetch = 0 : i64, scratch_operands = 3 : i64, tpu.core_type = #tpu.core_type<tc>, window_params = [{transform_indices = @transform_0, window_bounds = array<i64: 1>}, {transform_indices = @transform_1, window_bounds = array<i64: 1, 32, 128>}, {transform_indices = @transform_2, window_bounds = array<i64: 1, 128, 128>}, {pipeline_mode = #tpu.pipeline_mode<synchronous>, transform_indices = @transform_3, window_bounds = array<i64: 32, 32>}, {pipeline_mode = #tpu.pipeline_mode<synchronous>, transform_indices = @transform_4, window_bounds = array<i64: 16, 32>}, {pipeline_mode = #tpu.pipeline_mode<synchronous>, transform_indices = @transform_5, window_bounds = array<i64: 16, 1>}, {pipeline_mode = #tpu.pipeline_mode<synchronous>, transform_indices = @transform_6, window_bounds = array<i64: 16, 1>}, {transform_indices = @transform_7, window_bounds = array<i64: 1, 16, 128>}]} {
    %c0_i32 = arith.constant 0 : i32
    %0 = arith.cmpi eq, %arg0, %c0_i32 : i32
    %c0_i32_0 = arith.constant 0 : i32
    %1 = arith.cmpi eq, %arg1, %c0_i32_0 : i32
    %2 = arith.andi %0, %1 : i1
    %3 = arith.extui %2 : i1 to i32
    %c0_i32_1 = arith.constant 0 : i32
    %4 = arith.cmpi ne, %3, %c0_i32_1 : i32
    scf.if %4 {
      %cst = arith.constant 0.000000e+00 : f32
      %11 = vector.broadcast %cst : f32 to vector<16x1xf32>
      %c0 = arith.constant 0 : index
      %c0_5 = arith.constant 0 : index
      %12 = vector.load %arg11[%c0, %c0_5] : memref<16x1xf32, #tpu.memory_space<vmem>>, vector<16x1xf32>
      tpu.vector_store %arg11[%c0, %c0_5], %11 {strides = array<i32>} : memref<16x1xf32, #tpu.memory_space<vmem>>, vector<16x1xf32>,
      %cst_6 = arith.constant 0.000000e+00 : f32
      %13 = vector.broadcast %cst_6 : f32 to vector<16x1xf32>
      %c0_7 = arith.constant 0 : index
      %c0_8 = arith.constant 0 : index
      %14 = vector.load %arg12[%c0_7, %c0_8] : memref<16x1xf32, #tpu.memory_space<vmem>>, vector<16x1xf32>
      tpu.vector_store %arg12[%c0_7, %c0_8], %13 {strides = array<i32>} : memref<16x1xf32, #tpu.memory_space<vmem>>, vector<16x1xf32>,
    } else {
    }
    %c0_i32_2 = arith.constant 0 : i32
    %5 = arith.cmpi eq, %arg0, %c0_i32_2 : i32
    %6 = arith.extui %5 : i1 to i32
    %c0_i32_3 = arith.constant 0 : i32
    %7 = arith.cmpi ne, %6, %c0_i32_3 : i32
    scf.if %7 {
      %c0 = arith.constant 0 : index
      %11 = memref.load %arg2[%c0] : memref<1xf32, #tpu.memory_space<smem>>
      %c0_5 = arith.constant 0 : index
      %c0_6 = arith.constant 0 : index
      %c0_7 = arith.constant 0 : index
      %12 = vector.load %arg3[%c0_5, %c0_6, %c0_7] : memref<1x32x128xf32, #tpu.memory_space<vmem>>, vector<1x32x128xf32>
      %13 = vector.shape_cast %12 : vector<1x32x128xf32> to vector<32x128xf32>
      %c0_8 = arith.constant 0 : index
      %c0_9 = arith.constant 0 : index
      %c0_10 = arith.constant 0 : index
      %14 = vector.load %arg4[%c0_8, %c0_9, %c0_10] : memref<1x128x128xf32, #tpu.memory_space<vmem>>, vector<1x128x128xf32>
      %15 = vector.shape_cast %14 : vector<1x128x128xf32> to vector<128x128xf32>
      %cst = arith.constant dense<0.000000e+00> : vector<32x128xf32>
      %16 = tpu.matmul %13, %15, %cst {dimension_numbers = #tpu.dot_dimension_numbers<[1], [1], [0], [0], [0, 0, 1, 0], [], []>} : vector<32x128xf32>, vector<128x128xf32>, vector<32x128xf32> -> vector<32x128xf32>
      %cst_11 = arith.constant 1.000000e+00 : f32
      %17 = arith.addf %cst_11, %11 : f32
      %18 = vector.broadcast %17 : f32 to vector<32x128xf32>
      %19 = arith.mulf %18, %13 : vector<32x128xf32>
      %20 = arith.addf %19, %16 : vector<32x128xf32>
      %c0_12 = arith.constant 0 : index
      %c0_13 = arith.constant 0 : index
      %21 = vector.load %arg5[%c0_12, %c0_13] : memref<32x32xf32, #tpu.memory_space<vmem>>, vector<32x32xf32>
      %cst_14 = arith.constant dense<0.000000e+00> : vector<32x128xf32>
      %22 = tpu.matmul %21, %20, %cst_14 {dimension_numbers = #tpu.dot_dimension_numbers<[1], [0], [0], [1], [0, 0, 1, 1], [], []>} : vector<32x32xf32>, vector<32x128xf32>, vector<32x128xf32> -> vector<32x128xf32>
      %c0_15 = arith.constant 0 : index
      %c0_16 = arith.constant 0 : index
      %23 = vector.load %arg6[%c0_15, %c0_16] : memref<16x32xf32, #tpu.memory_space<vmem>>, vector<16x32xf32>
      %cst_17 = arith.constant dense<0.000000e+00> : vector<16x128xf32>
      %24 = tpu.matmul %23, %22, %cst_17 {dimension_numbers = #tpu.dot_dimension_numbers<[1], [0], [0], [1], [0, 0, 1, 1], [], []>} : vector<16x32xf32>, vector<32x128xf32>, vector<16x128xf32> -> vector<16x128xf32>
      %25 = arith.index_cast %arg1 : i32 to index
      %c0_18 = arith.constant 0 : index
      %c0_19 = arith.constant 0 : index
      %26 = vector.load %arg10[%25, %c0_18, %c0_19] : memref<2x16x128xf32, #tpu.memory_space<vmem>>, vector<1x16x128xf32>
      %27 = vector.shape_cast %26 : vector<1x16x128xf32> to vector<16x128xf32>
      %28 = vector.shape_cast %24 : vector<16x128xf32> to vector<1x16x128xf32>
      tpu.vector_store %arg10[%25, %c0_18, %c0_19], %28 {strides = array<i32>} : memref<2x16x128xf32, #tpu.memory_space<vmem>>, vector<1x16x128xf32>,
      %c0_20 = arith.constant 0 : index
      %c0_21 = arith.constant 0 : index
      %29 = vector.load %arg11[%c0_20, %c0_21] : memref<16x1xf32, #tpu.memory_space<vmem>>, vector<16x1xf32>
      %cst_22 = arith.constant dense<0.000000e+00> : vector<16xf32>
      %30 = vector.multi_reduction <add>, %24, %cst_22 [1] : vector<16x128xf32> to vector<16xf32>
      %31 = vector.shape_cast %30 : vector<16xf32> to vector<16x1xf32>
      %32 = arith.addf %29, %31 : vector<16x1xf32>
      %c0_23 = arith.constant 0 : index
      %c0_24 = arith.constant 0 : index
      %33 = vector.load %arg11[%c0_23, %c0_24] : memref<16x1xf32, #tpu.memory_space<vmem>>, vector<16x1xf32>
      tpu.vector_store %arg11[%c0_23, %c0_24], %32 {strides = array<i32>} : memref<16x1xf32, #tpu.memory_space<vmem>>, vector<16x1xf32>,
      %c0_25 = arith.constant 0 : index
      %c0_26 = arith.constant 0 : index
      %34 = vector.load %arg12[%c0_25, %c0_26] : memref<16x1xf32, #tpu.memory_space<vmem>>, vector<16x1xf32>
      %35 = arith.mulf %24, %24 : vector<16x128xf32>
      %cst_27 = arith.constant dense<0.000000e+00> : vector<16xf32>
      %36 = vector.multi_reduction <add>, %35, %cst_27 [1] : vector<16x128xf32> to vector<16xf32>
      %37 = vector.shape_cast %36 : vector<16xf32> to vector<16x1xf32>
      %38 = arith.addf %34, %37 : vector<16x1xf32>
      %c0_28 = arith.constant 0 : index
      %c0_29 = arith.constant 0 : index
      %39 = vector.load %arg12[%c0_28, %c0_29] : memref<16x1xf32, #tpu.memory_space<vmem>>, vector<16x1xf32>
      tpu.vector_store %arg12[%c0_28, %c0_29], %38 {strides = array<i32>} : memref<16x1xf32, #tpu.memory_space<vmem>>, vector<16x1xf32>,
    } else {
    }
    %c1_i32 = arith.constant 1 : i32
    %8 = arith.cmpi eq, %arg0, %c1_i32 : i32
    %9 = arith.extui %8 : i1 to i32
    %c0_i32_4 = arith.constant 0 : i32
    %10 = arith.cmpi ne, %9, %c0_i32_4 : i32
    scf.if %10 {
      %c0 = arith.constant 0 : index
      %c0_5 = arith.constant 0 : index
      %11 = vector.load %arg11[%c0, %c0_5] : memref<16x1xf32, #tpu.memory_space<vmem>>, vector<16x1xf32>
      %cst = arith.constant 3.906250e-03 : f32
      %12 = vector.broadcast %cst : f32 to vector<16x1xf32>
      %13 = arith.mulf %11, %12 : vector<16x1xf32>
      %c0_6 = arith.constant 0 : index
      %c0_7 = arith.constant 0 : index
      %14 = vector.load %arg12[%c0_6, %c0_7] : memref<16x1xf32, #tpu.memory_space<vmem>>, vector<16x1xf32>
      %cst_8 = arith.constant 3.906250e-03 : f32
      %15 = vector.broadcast %cst_8 : f32 to vector<16x1xf32>
      %16 = arith.mulf %14, %15 : vector<16x1xf32>
      %17 = arith.mulf %13, %13 : vector<16x1xf32>
      %18 = arith.subf %16, %17 : vector<16x1xf32>
      %cst_9 = arith.constant 9.99999974E-6 : f32
      %19 = vector.broadcast %cst_9 : f32 to vector<16x1xf32>
      %20 = arith.addf %18, %19 : vector<16x1xf32>
      %21 = math.rsqrt %20 : vector<16x1xf32>
      %c0_10 = arith.constant 0 : index
      %c0_11 = arith.constant 0 : index
      %22 = vector.load %arg7[%c0_10, %c0_11] : memref<16x1xf32, #tpu.memory_space<vmem>>, vector<16x1xf32>
      %23 = arith.mulf %22, %21 : vector<16x1xf32>
      %c0_12 = arith.constant 0 : index
      %c0_13 = arith.constant 0 : index
      %24 = vector.load %arg8[%c0_12, %c0_13] : memref<16x1xf32, #tpu.memory_space<vmem>>, vector<16x1xf32>
      %25 = arith.mulf %13, %23 : vector<16x1xf32>
      %26 = arith.subf %24, %25 : vector<16x1xf32>
      %27 = arith.index_cast %arg1 : i32 to index
      %c0_14 = arith.constant 0 : index
      %c0_15 = arith.constant 0 : index
      %28 = vector.load %arg10[%27, %c0_14, %c0_15] : memref<2x16x128xf32, #tpu.memory_space<vmem>>, vector<1x16x128xf32>
      %29 = vector.shape_cast %28 : vector<1x16x128xf32> to vector<16x128xf32>
      %30 = vector.broadcast %23 : vector<16x1xf32> to vector<16x128xf32>
      %31 = arith.mulf %29, %30 : vector<16x128xf32>
      %32 = vector.broadcast %26 : vector<16x1xf32> to vector<16x128xf32>
      %33 = arith.addf %31, %32 : vector<16x128xf32>
      %c0_16 = arith.constant 0 : index
      %c0_17 = arith.constant 0 : index
      %c0_18 = arith.constant 0 : index
      %34 = vector.load %arg9[%c0_16, %c0_17, %c0_18] : memref<1x16x128xf32, #tpu.memory_space<vmem>>, vector<1x16x128xf32>
      %35 = vector.shape_cast %34 : vector<1x16x128xf32> to vector<16x128xf32>
      %36 = vector.shape_cast %33 : vector<16x128xf32> to vector<1x16x128xf32>
      tpu.vector_store %arg9[%c0_16, %c0_17, %c0_18], %36 {strides = array<i32>} : memref<1x16x128xf32, #tpu.memory_space<vmem>>, vector<1x16x128xf32>,
    } else {
    }
    return
  }
  func.func @transform_0(%arg0: i32, %arg1: i32) -> i32 {
    %c0_i32 = arith.constant 0 : i32
    %c0_i32_0 = arith.constant 0 : i32
    return %c0_i32 : i32
  }
  func.func @transform_1(%arg0: i32, %arg1: i32) -> (i32, i32, i32) {
    %c1_i32 = arith.constant 1 : i32
    %0 = arith.subi %c1_i32, %arg0 : i32
    %1 = arith.muli %0, %arg1 : i32
    %c1_i32_0 = arith.constant 1 : i32
    %2 = arith.muli %arg0, %c1_i32_0 : i32
    %3 = arith.addi %1, %2 : i32
    %c0_i32 = arith.constant 0 : i32
    %c0_i32_1 = arith.constant 0 : i32
    %c0_i32_2 = arith.constant 0 : i32
    return %3, %c0_i32, %c0_i32_1 : i32, i32, i32
  }
  func.func @transform_2(%arg0: i32, %arg1: i32) -> (i32, i32, i32) {
    %c1_i32 = arith.constant 1 : i32
    %0 = arith.subi %c1_i32, %arg0 : i32
    %1 = arith.muli %0, %arg1 : i32
    %c1_i32_0 = arith.constant 1 : i32
    %2 = arith.muli %arg0, %c1_i32_0 : i32
    %3 = arith.addi %1, %2 : i32
    %c0_i32 = arith.constant 0 : i32
    %c0_i32_1 = arith.constant 0 : i32
    %c0_i32_2 = arith.constant 0 : i32
    return %3, %c0_i32, %c0_i32_1 : i32, i32, i32
  }
  func.func @transform_3(%arg0: i32, %arg1: i32) -> (i32, i32) {
    %c0_i32 = arith.constant 0 : i32
    %c0_i32_0 = arith.constant 0 : i32
    %c0_i32_1 = arith.constant 0 : i32
    return %c0_i32, %c0_i32_0 : i32, i32
  }
  func.func @transform_4(%arg0: i32, %arg1: i32) -> (i32, i32) {
    %c0_i32 = arith.constant 0 : i32
    %c0_i32_0 = arith.constant 0 : i32
    %c0_i32_1 = arith.constant 0 : i32
    return %c0_i32, %c0_i32_0 : i32, i32
  }
  func.func @transform_5(%arg0: i32, %arg1: i32) -> (i32, i32) {
    %c0_i32 = arith.constant 0 : i32
    %c0_i32_0 = arith.constant 0 : i32
    %c0_i32_1 = arith.constant 0 : i32
    return %c0_i32, %c0_i32_0 : i32, i32
  }
  func.func @transform_6(%arg0: i32, %arg1: i32) -> (i32, i32) {
    %c0_i32 = arith.constant 0 : i32
    %c0_i32_0 = arith.constant 0 : i32
    %c0_i32_1 = arith.constant 0 : i32
    return %c0_i32, %c0_i32_0 : i32, i32
  }
  func.func @transform_7(%arg0: i32, %arg1: i32) -> (i32, i32, i32) {
    %0 = arith.muli %arg0, %arg1 : i32
    %c0_i32 = arith.constant 0 : i32
    %c0_i32_0 = arith.constant 0 : i32
    %c0_i32_1 = arith.constant 0 : i32
    return %0, %c0_i32, %c0_i32_0 : i32, i32, i32
  }
}

</mosaic_0001>

<bundles_post_ra>
// kernel: tpu_custom_call.1
= control target key start
LH: loop header
LB: loop body
LE: loop exit
PB: predicated region body
PF: predicated region fallthrough
CT: control target
= control target key end

     0   :  { %s1803_s0 = inlined_call_operand.<no memory space> [shape: f32[1], index: 0, kind: input, shape index: {}]   ;;  %s1804_s1 = inlined_call_operand.hbm [shape: f32[2,32,128], index: 1, kind: input, shape index: {}]   ;;  %s1805_s2 = inlined_call_operand.hbm [shape: f32[2,128,128], index: 2, kind: input, shape index: {}]   ;;  %s1806_s3 = inlined_call_operand.vmem [shape: f32[32,32], index: 3, kind: input, shape index: {}]   ;;  %s1807_s4 = inlined_call_operand.vmem [shape: f32[16,32], index: 4, kind: input, shape index: {}]   ;;  %s1808_s5 = inlined_call_operand.vmem [shape: f32[16,1], index: 5, kind: input, shape index: {}]   ;;  %s1809_s6 = inlined_call_operand.vmem [shape: f32[16,1], index: 6, kind: input, shape index: {}]   ;;  %s1810_s7 = inlined_call_operand.hbm [shape: f32[2,16,128], index: 7, kind: output, shape index: {}]  }
   0x1   :  { %1820 = sst [smem:[#allocation21_spill]] %s1804_s1 }
   0x2   :  { %1821 = sst [smem:[#allocation22_spill]] %s1809_s6 }
   0x3   :  { %1822 = sst [smem:[#allocation23_spill]] %s1810_s7 }
   0x4   :  { %12 = sst [smem:[#allocation5]] %s1803_s0 }
   0x5   :  { %13 = vsyncpa [#allocation7], 0 }
   0x6   :  { %15 = vsyncpa [#allocation7 + $0x1], 0 }
   0x7   :  { %16 = vsyncpa [#allocation10], 0 }
   0x8   :  { %18 = vsyncpa [#allocation10 + $0x1], 0 }
   0x9   :  { %19 = vsyncpa [#allocation8], 0 }
   0xa   :  { %21 = vsyncpa [#allocation8 + $0x1], 0  ;;  %s1443_s26 = smov 0   ;;  %s1445_s27 = smov 0  }
   0xb   :  { %s1447_s28 = smov 0   ;;  %s1449_s29 = smov 0  }
   0xc   :  { %s1451_s30 = smov 0   ;;  %s1453_s8 = smov 0  }
   0xd   :  { %s1455_s9 = smov 0   ;;  %s1457_s0 = smov 0  }
   0xe   :  { %s1459_s10 = smov 0   ;;  %s1461_s11 = smov 0  }
   0xf   :  { %s1463_s12 = smov 0  }
  0x10 LB: > { %1823 = sst [smem:[#allocation15_spill]] %s1369_s8  ;;  %s907_s13 = sadd.s32 4294967295, %s1389_s12   ;;  %s1389_s12 = sphi %s1463_s12, %s27_s12   ;;  %s1385_s11 = sphi %s1461_s11, %s1848_s11   ;;  %s1381_s10 = sphi %s1459_s10, %s1847_s10   ;;  %s1377_s0 = sphi %s1457_s0, %s1846_s0   ;;  %s1373_s9 = sphi %s1455_s9, %s1845_s9   ;;  %s1369_s8 = sphi %s1453_s8, %s1844_s8   ;;  %s1365_s30 = sphi %s1451_s30, %s1853_s30   ;;  %s1361_s29 = sphi %s1449_s29, %s1852_s29   ;;  %s1357_s28 = sphi %s1447_s28, %s1851_s28   ;;  %s1353_s27 = sphi %s1445_s27, %s1850_s27   ;;  %s1349_s26 = sphi %s1443_s26, %s1849_s26  }
  0x11   : > { %1824 = sst [smem:[#allocation16_spill]] %s1381_s10  ;;  %s36_s15 = sadd.s32 1, %s1381_s10 }
  0x12   : > { %1825 = sst [smem:[#allocation17_spill]] %s1385_s11  ;;  %s39_s16 = sadd.s32 1, %s1385_s11 }
  0x13   : > { %p37_p0 = scmp.ge.s32.totalorder %s36_s15, 2  ;;  %s64_s17 = ssub.s32 1, %s1385_s11 }
  0x14   : > { %s65_s18 = smul.u32 %s1381_s10, %s64_s17  ;;  %s73_s19 = sadd.s32 1, %s1369_s8 }
  0x15   : > { %s1855_s15 = smov (%p37_p0, %s36_s15), 0  ;;  %s1857_s16 = smov (!%p37_p0, %s39_s16), %s1385_s11 }
  0x16   : > { %1826 = sst [smem:[#allocation18_spill]] %s1855_s15  ;;  %s1507_s20 = sadd.s32 %s1385_s11, %s65_s18 }
  0x17   : > { %p80_p1 = scmp.ne.s32.totalorder %s1369_s8, %s1365_s30  ;;  %p41_p2 = scmp.ge.s32.totalorder %s1857_s16, 2 }
  0x18   : > { %p81_p3 = scmp.eq.s32.totalorder %s1389_s12, 0  ;;  %p86_p4 = scmp.ne.s32.totalorder %s1365_s30, %s1361_s29 }
  0x19   : > { %p87_p5 = scmp.eq.s32.totalorder %s907_s13, 0  ;;  %s1859_s16 = smov (%p41_p2, %s1857_s16), 0 }
  0x1a   : > { %1827 = sst [smem:[#allocation19_spill]] %s1859_s16  ;;  %p1515_p6 = por %p81_p3, %p80_p1 }
  0x1b   : > { %p1519_p7 = por %p87_p5, %p86_p4  ;;  %s67_s23 = ssub.s32 1, %s1859_s16 }
  0x1c   : > { %s212_s24 = smul.u32 %s1381_s10, %s1385_s11  ;;  %s217_s29 = sadd.s32 1, %s1357_s28 }
  0x1d   : > { %s1829_s22 = scalar_select %p1519_p7, 1, 0 }
  0x1e   : > { %s68_s25 = smul.u32 %s67_s23, %s1855_s15  ;;  %p227_p8 = scmp.ne.s32.totalorder %s1357_s28, %s1353_s27 }
  0x1f   : > { %s213_s17 = smul.u32 %s1859_s16, %s1855_s15  ;;  %p228_p9 = scmp.eq.s32.totalorder %s907_s13, 3 }
  0x20   : > { %s69_s18 = sadd.s32 %s68_s25, %s1859_s16  ;;  %p233_p13 = scmp.ne.s32.totalorder %s1353_s27, %s1349_s26 }
  0x21   : > { %s70_s14 = ssub.s32 %s1507_s20, %s69_s18  ;;  %s214_s7 = ssub.s32 %s212_s24, %s213_s17 }
  0x22   : > { %p71_p10 = scmp.eq.s32.totalorder %s70_s14, 0  ;;  %p215_p11 = scmp.eq.s32.totalorder %s214_s7, 0 }
  0x23   : > { %p1534_p12 = por %p228_p9, %p227_p8  ;;  %s1832_s10 = sadd.s32 4294967294, %s1389_s12  }
  0x24   : > { %s1541_s11 = scalar_select %p71_p10, %s1369_s8, %s73_s19  }
  0x25   : > { %s1830_s6 = scalar_select %p1534_p12, 1, 0 }
  0x26   : > { %1831 = sst [smem:[#allocation20_spill]] %s1541_s11  ;;  %p234_p0 = scmp.eq.s32.totalorder %s1832_s10, 3 }
  0x27   : > { %s1544_s23 = scalar_select %p215_p11, %s1357_s28, %s217_s29  }
  0x28   : > { %p1101_p1 = scmp.lt.s32.totalorder %s1389_s12, 4  ;;  %s1550_s15 = sand.u32 1, %s1369_s8  }
  0x29   : > { %p1552_p2 = por %p234_p0, %p233_p13  ;;  %s911_s7 = sshll.u32 %s1550_s15, 5 }
  0x2a   : > { %s936_s14 = sshll.u32 %s1507_s20, 9  ;;  %s1834_s1 = sld [smem:[#allocation21_spill]] }
  0x2b   : > { %s1833_s13 = scalar_select %p1552_p2, 1, 0 }
  0x2c   : > { %s273_s10 = scalar_lea.vmem [#allocation6], %s911_s7  ;;  %p1565_p3 = pnand %p1101_p1, %p1515_p6 }
  0x2d   : > { %s283_s29 = sshll.u32 %s273_s10, 4  ;;  %s270_s18 = scalar_lea.sflag [#allocation7], %s1550_s15  ;;  %s1569_s29 = int_to_ptr.vmem [resolvable:$true] %s283_s29 }
  0x2e   : > { %p1205_p5 = pneg %p1565_p3 }
  0x30   : > { %s1561_s19 = scalar_lea.hbm %s1834_s1, %s936_s14  ;;  %s1208_s21 = scalar_lea.hbm %s1834_s1, 1024 }
  0x31   : > { %s1203_s16 = scalar_lea.hbm %s1561_s19, 512  ;;  %p1209_p6 = scmp.lt.u32.totalorder %s1561_s19, %s1834_s1 }
  0x32   : > { %p1204_p4 = scmp.ne.s32.totalorder %s1561_s19, %s1203_s16  ;;  %p1210_p10 = scmp.lt.u32.totalorder %s1208_s21, %s1203_s16 }
  0x33   : > { %p1212_p13 = scmp.lt.u32.totalorder %s1203_s16, %s1561_s19 }
  0x34   : > { %p1206_p8 = pnand %p1205_p5, %p1204_p4  ;;  %p1211_p11 = por %p1210_p10, %p1209_p6 }
  0x36   : > { %p1207_p9 = pneg %p1206_p8  ;;  %p1213_p0 = por %p1212_p13, %p1211_p11 }
  0x38   : > { %p1214_p1 = pnand %p1213_p0, %p1207_p9 }
  0x3a   : > { %1217 = shalt.err (!%p1214_p1)
}
  0x3b   : > { %s1218_s10 = scalar_lea.vmem %s1569_s29, 512  ;;  %s1391_s7 = smov [#allocation6]  }
  0x3c   : > { %p1219_p4 = scmp.ne.s32.totalorder %s1569_s29, %s1218_s10  ;;  %s1223_s14 = sshll.u32 %s1391_s7, 4  ;;  %s1224_s14 = int_to_ptr.vmem [resolvable:$false] %s1223_s14 }
  0x3d   : > { %s1225_s24 = scalar_lea.vmem %s1224_s14, 1024  ;;  %p1226_p12 = scmp.lt.s32.totalorder %s1569_s29, %s1224_s14 }
  0x3e   : > { %p1221_p8 = pnand %p1219_p4, %p1205_p5  ;;  %p1227_p6 = scmp.lt.s32.totalorder %s1225_s24, %s1218_s10 }
  0x40   : > { %p1222_p2 = pneg %p1221_p8  ;;  %p1228_p10 = por %p1227_p6, %p1226_p12 }
  0x42   : > { %p1229_p11 = pnand %p1228_p10, %p1222_p2 }
  0x44   : > { %1232 = shalt.err (!%p1229_p11)
}
  0x45   : > { %s1392_s16 = smov 128   ;;  %s1393_s21 = smov 8  }
  0x46   : > { %1093 = dma.hbm_to_vmem [thread:$0]  (!%p1565_p3), %s1561_s19, 512, %s1569_s29, %s270_s18, %s1392_s16, %s1392_s16, %s1393_s21  }
  0x47   : > { %p917_p12 = scmp.ge.s32.totalorder %s1389_s12, 1  ;;  %p315_p2 = scmp.lt.s32.totalorder %s1389_s12, 5 }
  0x48   : > { %s914_s25 = sshll.u32 %s1550_s15, 7  ;;  %s937_s7 = sshll.u32 %s1507_s20, 11 }
  0x49   : > { %p1605_p9 = pnand %p917_p12, %p315_p2  ;;  %s297_s14 = scalar_lea.vmem [#allocation9], %s914_s25 }
  0x4a   : > { %s307_s24 = sshll.u32 %s297_s14, 4  ;;  %s1613_s8 = scalar_lea.hbm %s1805_s2, %s937_s7  ;;  %s1615_s24 = int_to_ptr.vmem [resolvable:$true] %s307_s24 }
  0x4b   : > { %s294_s19 = scalar_lea.sflag [#allocation10], %s1550_s15  ;;  %s1233_s29 = scalar_lea.hbm %s1613_s8, 2048 }
  0x4c   : > { %p1234_p13 = scmp.ne.s32.totalorder %s1613_s8, %s1233_s29  ;;  %s1238_s25 = scalar_lea.hbm %s1805_s2, 4096 }
  0x4d   : > { %p1239_p4 = scmp.lt.u32.totalorder %s1613_s8, %s1805_s2  ;;  %p1240_p8 = scmp.lt.u32.totalorder %s1238_s25, %s1233_s29 }
  0x4e   : > { %p1236_p0 = pnand %p1234_p13, %p1205_p5  ;;  %p1242_p10 = scmp.lt.u32.totalorder %s1233_s29, %s1613_s8 }
  0x4f   : > { %p1241_p6 = por %p1240_p8, %p1239_p4 }
  0x50   : > { %p1237_p1 = pneg %p1236_p0 }
  0x51   : > { %p1243_p11 = por %p1242_p10, %p1241_p6 }
  0x53   : > { %p1244_p12 = pnand %p1243_p11, %p1237_p1 }
  0x55   : > { %1247 = shalt.err (!%p1244_p12)
}
  0x56   : > { %s1248_s7 = scalar_lea.vmem %s1615_s24, 2048  ;;  %s1394_s14 = smov [#allocation9]  }
  0x57   : > { %p1249_p2 = scmp.ne.s32.totalorder %s1615_s24, %s1248_s7  ;;  %s1253_s20 = sshll.u32 %s1394_s14, 4  ;;  %s1254_s20 = int_to_ptr.vmem [resolvable:$false] %s1253_s20 }
  0x58   : > { %s1255_s18 = scalar_lea.vmem %s1254_s20, 4096  ;;  %p1256_p7 = scmp.lt.s32.totalorder %s1615_s24, %s1254_s20 }
  0x59   : > { %p1251_p13 = pnand %p1249_p2, %p1205_p5  ;;  %p1257_p4 = scmp.lt.s32.totalorder %s1255_s18, %s1248_s7 }
  0x5b   : > { %p1252_p0 = pneg %p1251_p13  ;;  %p1258_p8 = por %p1257_p4, %p1256_p7 }
  0x5d   : > { %p1259_p6 = pnand %p1258_p8, %p1252_p0 }
  0x5f   : > { %1262 = shalt.err (!%p1259_p6)
}
  0x60   : > { %1096 = dma.hbm_to_vmem [thread:$0]  (!%p1565_p3), %s1613_s8, 2048, %s1615_s24, %s294_s19, %s1392_s16, %s1392_s16, %s1393_s21  }
  0x61   : > { %319 = sbr.rel (%p1605_p9) target bundleno = 1190 (0x4a6), region = 48  ;;  %s321_s29 = sand.u32 (!%p1605_p9), 1, %s1365_s30  }
  0x62   : > { %s918_s25 = sshll.u32 (!%p1605_p9), %s321_s29, 5  ;;  %s322_s1 = scalar_lea.sflag (!%p1605_p9), [#allocation7], %s321_s29 }
  0x63   : > { %s1649_s11 = scalar_lea.vmem (!%p1605_p9), [#allocation6], %s918_s25  ;;  %p1837_p7 = scmp.ne.s32.totalorder (!%p1605_p9), %s1829_s22, 0 }
  0x68   : > { %1336 = dma.done.wait (%p1837_p7), %s322_s1, 512  }
  0x69   : > { %1338 = vsyncadd (%p1837_p7), %s322_s1, 4294966784  ;;  %s919_s15 = sshll.u32 %s321_s29, 7  ;;  %s331_s17 = scalar_lea.sflag [#allocation10], %s321_s29 }
  0x6a   : > { %s1655_s7 = scalar_lea.vmem [#allocation9], %s919_s15 }
  0x6b   : > { %1340 = dma.done.wait (%p1837_p7), %s331_s17, 2048  }
  0x6c   : > { %1342 = vsyncadd (%p1837_p7), %s331_s17, 4294965248  ;;  %s367_s8 = sand.u32 1, %s1353_s27   ;;  %p377_p3 = scmp.eq.s32.totalorder %s1377_s0, 0 }
  0x6d   : > { %s920_s16 = sshll.u32 %s367_s8, 4  ;;  %p378_p5 = scmp.eq.s32.totalorder %s1373_s9, 0 }
  0x6e   : > { %s1666_s21 = scalar_lea.vmem [#allocation11], %s920_s16 }
  0x6f   : > { %p379_p9 = pnand %p378_p5, %p377_p3 }
  0x70   : > { %vm383_vm0 = vcmask (!%p379_p9), 7168   ;;  %v1395_v0 = vmov (!%p379_p9), 0.0  }
  0x71   : > { %382 = sbr.rel (%p379_p9) target bundleno = 120 (0x78), region = 60  ;;  %384 = vst.msk [vmem:[#allocation3] sm:$0xff] (!%p379_p9), %vm383_vm0, %v1395_v0  ;;  %385 = vst.msk [vmem:[#allocation3 + $0x8] sm:$0xff] (!%p379_p9), %vm383_vm0, %v1395_v0 }
  0x72   : > { %386 = vst.msk [vmem:[#allocation4] sm:$0xff] (!%p379_p9), %vm383_vm0, %v1395_v0  ;;  %387 = vst.msk [vmem:[#allocation4 + $0x8] sm:$0xff] (!%p379_p9), %vm383_vm0, %v1395_v0 }
  0x78 PF: > { %p921_p1 = scmp.ne.s32.totalorder %s1377_s0, 0 }
  0x79   : > { %v396_v1 = vld [vmem:[%s1655_s7] sm:$0xff] (!%p921_p1)  ;;  %v397_v2 = vld [vmem:[%s1655_s7 + $0x8] sm:$0xff] (!%p921_p1)  ;;  %v398_v3 = vld [vmem:[%s1655_s7 + $0x10] sm:$0xff] (!%p921_p1)  ;;  %vm511_vm1 = vcmask (!%p921_p1), 261120   ;;  %s391_s24 = sld [smem:[#allocation5]] (!%p921_p1)  ;;  %s928_s16 = sshll.u32 (!%p921_p1), %s1373_s9, 4 }
  0x7a   : > { %390 = sbr.rel (%p921_p1) target bundleno = 1000 (0x3e8), region = 64  ;;  %v1036_v4 = vpack.c.bf16 (!%p921_p1), %v397_v2, %v396_v1  ;;  %v399_v5 = vld [vmem:[%s1655_s7 + $0x18] sm:$0xff] (!%p921_p1)  ;;  %v392_v7 = vld [vmem:[%s1649_s11] sm:$0xff] (!%p921_p1)  ;;  %v401_v9 = vld [vmem:[%s1655_s7 + $0x28] sm:$0xff] (!%p921_p1)  ;;  %s693_s22 = scalar_lea.vmem (!%p921_p1), [#allocation2], %s928_s16  ;;  %vm704_vm2 = vcmask (!%p921_p1), 7168  }
  0x7b   : > { %v1040_v6 = vpack.c.bf16 (!%p921_p1), %v399_v5, %v398_v3  ;;  %v400_v8 = vld [vmem:[%s1655_s7 + $0x20] sm:$0xff] (!%p921_p1)  ;;  %1005 = vmatprep.mubr.f32.mxu0 (!%p921_p1), %v392_v7  ;;  %v402_v11 = vld [vmem:[%s1655_s7 + $0x30] sm:$0xff] (!%p921_p1)  ;;  %v403_v12 = vld [vmem:[%s1655_s7 + $0x38] sm:$0xff] (!%p921_p1) }
  0x7c   : > { %1037 = vmatprep.subr.bf16.mxu0 (!%p921_p1), %v1036_v4  ;;  %v1044_v10 = vpack.c.bf16 (!%p921_p1), %v401_v9, %v400_v8  ;;  %v1048_v13 = vpack.c.bf16 (!%p921_p1), %v403_v12, %v402_v11  ;;  %v404_v14 = vld [vmem:[%s1655_s7 + $0x40] sm:$0xff] (!%p921_p1)  ;;  %v405_v15 = vld [vmem:[%s1655_s7 + $0x48] sm:$0xff] (!%p921_p1)  ;;  %v406_v17 = vld [vmem:[%s1655_s7 + $0x50] sm:$0xff] (!%p921_p1) }
  0x7d   : > { %1039 = vmatpush3.bf16.xpose.msra.mxu0 (!%p921_p1), %v1036_v4  ;;  %v1052_v16 = vpack.c.bf16 (!%p921_p1), %v405_v15, %v404_v14  ;;  %v407_v18 = vld [vmem:[%s1655_s7 + $0x58] sm:$0xff] (!%p921_p1)  ;;  %v408_v20 = vld [vmem:[%s1655_s7 + $0x60] sm:$0xff] (!%p921_p1)  ;;  %v409_v21 = vld [vmem:[%s1655_s7 + $0x68] sm:$0xff] (!%p921_p1) }
  0x7e   : > { %1041 = vmatprep.subr.bf16.mxu0 (!%p921_p1), %v1040_v6  ;;  %v1056_v19 = vpack.c.bf16 (!%p921_p1), %v407_v18, %v406_v17  ;;  %v1060_v22 = vpack.c.bf16 (!%p921_p1), %v409_v21, %v408_v20  ;;  %v410_v23 = vld [vmem:[%s1655_s7 + $0x70] sm:$0xff] (!%p921_p1)  ;;  %v411_v24 = vld [vmem:[%s1655_s7 + $0x78] sm:$0xff] (!%p921_p1)  ;;  %v393_v26 = vld [vmem:[%s1649_s11 + $0x8] sm:$0xff] (!%p921_p1) }
  0x7f   : > { %v1064_v25 = vpack.c.bf16 (!%p921_p1), %v411_v24, %v410_v23  ;;  %v394_v27 = vld [vmem:[%s1649_s11 + $0x10] sm:$0xff] (!%p921_p1)  ;;  %v395_v28 = vld [vmem:[%s1649_s11 + $0x18] sm:$0xff] (!%p921_p1)  ;;  %v507_v29 = vld [vmem:[%s1806_s3] sm:$0xff] (!%p921_p1)  ;;  %s497_s19 = sadd.f32 (!%p921_p1), 1.0, %s391_s24 }
  0x80   : > { %1019 = vmatprep.mubr.msk.f32.mxu1 (!%p921_p1), %vm511_vm1, %v507_v29  ;;  %v508_v45 = vld [vmem:[%s1806_s3 + $0x8] sm:$0xff] (!%p921_p1)  ;;  %v509_v46 = vld [vmem:[%s1806_s3 + $0x10] sm:$0xff] (!%p921_p1)  ;;  %v510_v47 = vld [vmem:[%s1806_s3 + $0x18] sm:$0xff] (!%p921_p1) }
  0x81   : > { %v498_v30 = vstv %s497_s19  ;;  %v609_v48 = vld [vmem:[%s1807_s4] sm:$0xff]  ;;  %v610_v55 = vld [vmem:[%s1807_s4 + $0x8] sm:$0xff]  ;;  %v707_v62 = vld [vmem:[#allocation4] sm:$0xff] }
  0x82   : > { %v500_v31 = vmul.f32 %v498_v30, %v393_v26  ;;  %v499_v32 = vmul.f32 %v498_v30, %v392_v7  ;;  %v502_v36 = vmul.f32 %v498_v30, %v395_v28  ;;  %v501_v38 = vmul.f32 %v498_v30, %v394_v27  ;;  %v696_v60 = vld [vmem:[#allocation3] sm:$0xff]  ;;  %v697_v1 = vld [vmem:[#allocation3 + $0x8] sm:$0xff]  ;;  %v708_v4 = vld [vmem:[#allocation4 + $0x8] sm:$0xff] }
  0x85   : > { %1043 = vmatpush3.bf16.xpose.msra.mxu0 %v1040_v6 }
  0x86   : > { %1045 = vmatprep.subr.bf16.mxu0 %v1044_v10 }
  0x8d   : > { %1047 = vmatpush3.bf16.xpose.msra.mxu0 %v1044_v10 }
  0x8e   : > { %1049 = vmatprep.subr.bf16.mxu0 %v1048_v13 }
  0x95   : > { %1051 = vmatpush3.bf16.xpose.msra.mxu0 %v1048_v13 }
  0x96   : > { %1053 = vmatprep.subr.bf16.mxu0 %v1052_v16 }
  0x9d   : > { %1055 = vmatpush3.bf16.xpose.msra.mxu0 %v1052_v16 }
  0x9e   : > { %1057 = vmatprep.subr.bf16.mxu0 %v1056_v19 }
  0xa5   : > { %1059 = vmatpush3.bf16.xpose.msra.mxu0 %v1056_v19 }
  0xa6   : > { %1061 = vmatprep.subr.bf16.mxu0 %v1060_v22 }
  0xad   : > { %1063 = vmatpush3.bf16.xpose.msra.mxu0 %v1060_v22 }
  0xae   : > { %1065 = vmatprep.subr.bf16.mxu0 %v1064_v25 }
  0xb5   : > { %1067 = vmatpush3.bf16.xpose.msra.mxu0 %v1064_v25 }
  0xbc   : > { %1006 = vmatmul.mubr.f32.vlgmr.msra.gmra.mrb[0].mxu0 %v393_v26 }
  0xbd   : > { %1008 = vmatprep.mubr.f32.mxu0 %v394_v27 }
  0xc0   : > { %1009 = vmatmul.mubr.f32.gmra.mrb[2].mxu0 %v395_v28 }
 0x18f   : > { %v1007_v33 = vpop.f32.mrb[0].mxu0 }
 0x190   : > { %v504_v34 = vadd.f32 %v1007_v33, %v500_v31  ;;  %v478_v35 = vpop.f32.mrb[1].mxu0 }
 0x191   : > { %v503_v37 = vadd.f32 %v499_v32, %v478_v35 }
 0x193   : > { %v1010_v39 = vpop.f32.mrb[2].mxu0  ;;  %v1068_v40 = vpack.c.bf16 %v504_v34, %v503_v37 }
 0x194   : > { %v506_v41 = vadd.f32 %v1010_v39, %v502_v36  ;;  %v488_v42 = vpop.f32.mrb[3].mxu0 }
 0x195   : > { %v505_v43 = vadd.f32 %v501_v38, %v488_v42  ;;  %1069 = vmatprep.subr.bf16.mxu1 %v1068_v40 }
 0x196   : > { %1071 = vmatpush3.bf16.msra.mxu1 %v1068_v40 }
 0x197   : > { %v1072_v44 = vpack.c.bf16 %v506_v41, %v505_v43 }
 0x199   : > { %1073 = vmatprep.subr.bf16.mxu1 %v1072_v44 }
 0x19a   : > { %1075 = vmatpush3.bf16.msra.mxu1 %v1072_v44 }
 0x19d   : > { %1020 = vmatmul.mubr.msk.f32.vlgmr.msra.gmra.mrb[0].mxu1 %vm511_vm1, %v508_v45 }
 0x19e   : > { %1022 = vmatprep.mubr.msk.f32.mxu1 %vm511_vm1, %v509_v46 }
 0x1a1   : > { %1023 = vmatmul.mubr.msk.f32.gmra.mrb[2].mxu1 %vm511_vm1, %v510_v47 }
 0x1a2   : > { %1033 = vmatprep.mubr.msk.f32.mxu1 %vm511_vm1, %v609_v48 }
 0x270   : > { %v1021_v49 = vpop.f32.mrb[0].mxu1 }
 0x271   : > { %v590_v50 = vpop.f32.mrb[1].mxu1 }
 0x272   : > { %v1076_v51 = vpack.c.bf16 %v1021_v49, %v590_v50 }
 0x274   : > { %v1024_v52 = vpop.f32.mrb[2].mxu1  ;;  %1077 = vmatprep.subr.bf16.mxu1 %v1076_v51 }
 0x275   : > { %v600_v53 = vpop.f32.mrb[3].mxu1  ;;  %1079 = vmatpush3.bf16.msra.mxu1 %v1076_v51 }
 0x276   : > { %v1080_v54 = vpack.c.bf16 %v1024_v52, %v600_v53 }
 0x278   : > { %1081 = vmatprep.subr.bf16.mxu1 %v1080_v54 }
 0x279   : > { %1083 = vmatpush3.bf16.msra.mxu1 %v1080_v54 }
 0x27c   : > { %1034 = vmatmul.mubr.msk.f32.vlgmr.msra.gmra.mrb[4].mxu1 %vm511_vm1, %v610_v55 }
 0x34f   : > { %v1035_v56 = vpop.f32.mrb[4].mxu1 }
 0x350   : > { %v683_v57 = vpop.f32.mrb[5].mxu1  ;;  %695 = vst [vmem:[%s693_s22 + $0x8] sm:$0xff] %v1035_v56  ;;  %v710_v59 = vmul.f32 %v1035_v56, %v1035_v56 }
 0x351   : > { %694 = vst [vmem:[%s693_s22] sm:$0xff] %v683_v57  ;;  %698 = vadd.xlane.f32.xlu0 %v683_v57  ;;  %v709_v58 = vmul.f32 %v683_v57, %v683_v57 }
 0x353   : > { %711 = vadd.xlane.f32.xlu1 %v709_v58 }
 0x355   : > { %700 = vadd.xlane.f32.xlu0 %v1035_v56 }
 0x357   : > { %713 = vadd.xlane.f32.xlu1 %v710_v59 }
 0x3de   : > { %v699_v61 = vpop.xlane.xlu0 %698 }
 0x3df   : > { %v702_v63 = vadd.f32 %v699_v61, %v696_v60 }
 0x3e0   : > { %v712_v0 = vpop.xlane.xlu1 %711 }
 0x3e1   : > { %705 = vst.msk [vmem:[#allocation3] sm:$0xff] %vm704_vm2, %v702_v63  ;;  %v715_v2 = vadd.f32 %v712_v0, %v707_v62 }
 0x3e2   : > { %v701_v3 = vpop.xlane.xlu0 %700 }
 0x3e3   : > { %717 = vst.msk [vmem:[#allocation4] sm:$0xff] %vm704_vm2, %v715_v2  ;;  %v703_v5 = vadd.f32 %v701_v3, %v697_v1 }
 0x3e4   : > { %v714_v6 = vpop.xlane.xlu1 %713 }
 0x3e5   : > { %706 = vst.msk [vmem:[#allocation3 + $0x8] sm:$0xff] %vm704_vm2, %v703_v5  ;;  %v716_v7 = vadd.f32 %v714_v6, %v708_v4 }
 0x3e7   : > { %718 = vst.msk [vmem:[#allocation4 + $0x8] sm:$0xff] %vm704_vm2, %v716_v7 }
 0x3e8 PF: > { %p929_p10 = scmp.ne.s32.totalorder %s1377_s0, 1 }
 0x3e9   : > { %v723_v8 = vld [vmem:[#allocation3] sm:$0xff] (!%p929_p10)  ;;  %v1396_v10 = vmov (!%p929_p10), 0   ;;  %v740_v24 = vld [vmem:[%s1808_s5 + $0x8] sm:$0xff] (!%p929_p10)  ;;  %s1838_s29 = sld [smem:[#allocation22_spill]] (!%p929_p10)  ;;  %s930_s15 = sshll.u32 (!%p929_p10), %s1373_s9, 4 }
 0x3ea   : > { %722 = sbr.rel (%p929_p10) target bundleno = 1162 (0x48a), region = 68  ;;  %v727_v9 = vld [vmem:[#allocation4] sm:$0xff] (!%p929_p10)  ;;  %1197 = vset.pattern.permute.xlu0 (!%p929_p10), %v1396_v10  ;;  %v725_v11 = vmul.f32 (!%p929_p10), 0.00390625, %v723_v8  ;;  %1198 = vset.pattern.permute.xlu1 (!%p929_p10), %v1396_v10  ;;  %v739_v23 = vld [vmem:[%s1808_s5] sm:$0xff] (!%p929_p10)  ;;  %s750_s17 = scalar_lea.vmem (!%p929_p10), [#allocation2], %s930_s15 }
 0x3eb   : > { %v729_v12 = vmul.f32 (!%p929_p10), 0.00390625, %v727_v9  ;;  %v751_v35 = vld [vmem:[%s750_s17] sm:$0xff] (!%p929_p10)  ;;  %v752_v38 = vld [vmem:[%s750_s17 + $0x8] sm:$0xff] (!%p929_p10) }
 0x3ec   : > { %v724_v13 = vld [vmem:[#allocation3 + $0x8] sm:$0xff] (!%p929_p10)  ;;  %v731_v17 = vmul.f32 (!%p929_p10), %v725_v11, %v725_v11 }
 0x3ed   : > { %v726_v15 = vmul.f32 (!%p929_p10), 0.00390625, %v724_v13 }
 0x3ee   : > { %v728_v14 = vld [vmem:[#allocation4 + $0x8] sm:$0xff] (!%p929_p10)  ;;  %v733_v19 = vsub.f32 (!%p929_p10), %v729_v12, %v731_v17 }
 0x3ef   : > { %v730_v16 = vmul.f32 (!%p929_p10), 0.00390625, %v728_v14  ;;  %v732_v18 = vmul.f32 (!%p929_p10), %v726_v15, %v726_v15  ;;  %s1839_s25 = smov (!%p929_p10), %s1838_s29  ;;  %v743_v29 = vld [vmem:[%s1838_s29] sm:$0xff] (!%p929_p10) }
 0x3f0   : > { %v735_v21 = vadd.f32 (!%p929_p10), 1e-05, %v733_v19  ;;  %v744_v31 = vld [vmem:[%s1839_s25 + $0x8] sm:$0xff] (!%p929_p10) }
 0x3f1   : > { %v734_v20 = vsub.f32 %v730_v16, %v732_v18 }
 0x3f2   : > { %1199 = vrsqrt.f32 %v735_v21 }
 0x3f3   : > { %v736_v22 = vadd.f32 1e-05, %v734_v20 }
 0x3f5   : > { %1201 = vrsqrt.f32 %v736_v22 }
 0x3fc   : > { %v1200_v25 = vpop.eup %1199 }
 0x3fd   : > { %v741_v27 = vmul.f32 %v1200_v25, %v739_v23 }
 0x3ff   : > { %v1202_v26 = vpop.eup %1201  ;;  %755 = vperm.xlu0 %1197, %v741_v27   ;;  %v745_v30 = vmul.f32 %v741_v27, %v725_v11 }
 0x400   : > { %v742_v28 = vmul.f32 %v1202_v26, %v740_v24 }
 0x401   : > { %v747_v33 = vsub.f32 %v743_v29, %v745_v30 }
 0x402   : > { %v746_v32 = vmul.f32 %v742_v28, %v726_v15 }
 0x403   : > { %760 = vperm.xlu0 %1197, %v742_v28   ;;  %767 = vperm.xlu1 %1198, %v747_v33  }
 0x404   : > { %v748_v34 = vsub.f32 %v744_v31, %v746_v32 }
 0x407   : > { %772 = vperm.xlu1 %1198, %v748_v34  }
 0x47e   : > { %v756_v36 = vpop.permute.xlu0 %755 }
 0x47f   : > { %v763_v37 = vmul.f32 %v756_v36, %v751_v35 }
 0x482   : > { %v761_v39 = vpop.permute.xlu0 %760  ;;  %v768_v40 = vpop.permute.xlu1 %767 }
 0x483   : > { %v775_v41 = vadd.f32 %v768_v40, %v763_v37  ;;  %v764_v42 = vmul.f32 %v761_v39, %v752_v38 }
 0x485   : > { %777 = vst [vmem:[%s1666_s21] sm:$0xff] %v775_v41 }
 0x486   : > { %v773_v43 = vpop.permute.xlu1 %772 }
 0x487   : > { %v776_v44 = vadd.f32 %v773_v43, %v764_v42 }
 0x489   : > { %778 = vst [vmem:[%s1666_s21 + $0x8] sm:$0xff] %v776_v44 }
 0x48a PF: > { %s787_s7 = smul.u32 %s1373_s9, %s1377_s0  ;;  %s794_s16 = sshll.u32 %s1666_s21, 4  ;;  %s1733_s16 = int_to_ptr.vmem [resolvable:$true] %s794_s16 }
 0x48b   : > { %s1840_s19 = sld [smem:[#allocation23_spill]]  ;;  %s1742_s20 = scalar_lea.sflag [#allocation8], %s367_s8 }
 0x48c   : > { %s938_s22 = sshll.u32 %s787_s7, 8  ;;  %s1263_s18 = scalar_lea.vmem %s1733_s16, 256 }
 0x48d   : > { %p1264_p11 = scmp.ne.s32.totalorder %s1733_s16, %s1263_s18  ;;  %p1841_p12 = scmp.ne.s32.totalorder %s1830_s6, 0 }
 0x48e   : > { %s1397_s9 = smov [#allocation11]  }
 0x48f   : > { %p1265_p2 = pnand %p1264_p11, %p1841_p12  ;;  %s1267_s0 = sshll.u32 %s1397_s9, 4  ;;  %s1268_s0 = int_to_ptr.vmem [resolvable:$false] %s1267_s0 }
 0x490   : > { %s1269_s21 = scalar_lea.vmem %s1268_s0, 512  ;;  %p1270_p0 = scmp.lt.s32.totalorder %s1733_s16, %s1268_s0 }
 0x491   : > { %s1738_s14 = scalar_lea.hbm %s1840_s19, %s938_s22  ;;  %p1266_p13 = pneg %p1265_p2 }
 0x492   : > { %p1271_p4 = scmp.lt.s32.totalorder %s1269_s21, %s1263_s18 }
 0x494   : > { %p1272_p8 = por %p1271_p4, %p1270_p0 }
 0x496   : > { %p1273_p6 = pnand %p1272_p8, %p1266_p13 }
 0x498   : > { %1276 = shalt.err (!%p1273_p6)
}
 0x499   : > { %s1277_s8 = scalar_lea.hbm %s1738_s14, 256  ;;  %s1281_s11 = scalar_lea.hbm %s1840_s19, 512 }
 0x49a   : > { %p1278_p7 = scmp.ne.s32.totalorder %s1738_s14, %s1277_s8  ;;  %p1282_p9 = scmp.lt.u32.totalorder %s1738_s14, %s1840_s19 }
 0x49b   : > { %p1283_p1 = scmp.lt.u32.totalorder %s1281_s11, %s1277_s8  ;;  %p1285_p11 = scmp.lt.u32.totalorder %s1277_s8, %s1738_s14 }
 0x49c   : > { %p1279_p3 = pnand %p1278_p7, %p1841_p12 }
 0x49d   : > { %p1284_p10 = por %p1283_p1, %p1282_p9 }
 0x49e   : > { %p1280_p5 = pneg %p1279_p3 }
 0x49f   : > { %p1286_p2 = por %p1285_p11, %p1284_p10 }
 0x4a1   : > { %p1287_p13 = pnand %p1286_p2, %p1280_p5 }
 0x4a3   : > { %1290 = shalt.err (!%p1287_p13)
}
 0x4a4   : > { %s1398_s7 = smov 128   ;;  %s1399_s22 = smov 8  }
 0x4a5   : > { %1088 = dma.vmem_to_hbm [thread:$0]  (%p1841_p12), %s1733_s16, 256, %s1738_s14, %s1742_s20, %s1398_s7, %s1398_s7, %s1399_s22  }
 0x4a6 PF: > { %p1102_p0 = scmp.ge.s32.totalorder %s1389_s12, 2  ;;  %s809_s10 = sand.u32 1, %s1349_s26  }
 0x4a7   : > { %p1842_p4 = scmp.ne.s32.totalorder %s1833_s13, 0  ;;  %s810_s24 = scalar_lea.sflag [#allocation8], %s809_s10 }
 0x4a9   : > { %p1098_p8 = pnand %p1102_p0, %p1842_p4 }
 0x4ab   : > { %1344 = dma.done.wait (!%p1098_p8), %s810_s24, 256  }
 0x4ac   : > { %1346 = vsyncadd (!%p1098_p8), %s810_s24, 4294967040  ;;  %s27_s12 = sadd.s32 1, %s1389_s12   ;;  %s1843_s6 = sld [smem:[#allocation15_spill]] }
 0x4ad   : > { %p24_p6 = scmp.ge.s32.totalorder %s27_s12, 6   ;;  %s1844_s8 = sld [smem:[#allocation20_spill]] }
 0x4ae   : > { %s1845_s9 = sld [smem:[#allocation16_spill]]  ;;  %s1846_s0 = sld [smem:[#allocation17_spill]] }
 0x4af   : > { %s1847_s10 = sld [smem:[#allocation18_spill]]  ;;  %s1848_s11 = sld [smem:[#allocation19_spill]] }
 0x4b0   : > { %s1849_s26 = smov %s1353_s27  ;;  %s1850_s27 = smov %s1357_s28 }
 0x4b1   : > { %s1851_s28 = smov %s1544_s23  ;;  %s1852_s29 = smov %s1365_s30 }
 0x4b2   : > { %s1853_s30 = smov %s1843_s6  ;;  %26 = sbr.rel (!%p24_p6) target bundleno = 16 (0x10), region = 120 }
 0x4b9   :  { %815 = vsyncpa [#allocation7], 1 }
 0x4ba   :  { %817 = vsyncpa [#allocation7 + $0x1], 1 }
 0x4bb   :  { %818 = vsyncpa [#allocation10], 1 }
 0x4bc   :  { %820 = vsyncpa [#allocation10 + $0x1], 1 }
 0x4bd   :  { %821 = vsyncpa [#allocation8], 1 }
 0x4be   :  { %823 = vsyncpa [#allocation8 + $0x1], 1 }

</bundles_post_ra>
